<compile_context>
chip_gen: v5e
topology: v5e:2x2
jax: 0.10.0
libtpu: 0.0.40
codegen_flags: <defaults>
</compile_context>

<pallas_src>
import functools

import jax
import jax.numpy as jnp
from jax import lax
from jax.experimental import pallas as pl
from jax.experimental.pallas import tpu as pltpu


def kf_kernel(a_ref, c_ref, k_ref, x0_ref, psqrt0t_ref, obs_ref, yvar_ref,
              kobs_ref, xs_ref, pt_ref):
    """Kalman-filter innovation-covariance kernel.

    Inputs:
      a_ref       (n, n)   A
      c_ref       (m, n)   C
      k_ref       (n, m)   K
      x0_ref      (1, n)   x0 as a row vector
      psqrt0t_ref (n, n)   chol(P0)^T
      obs_ref     (T, m)   observations
    Output:
      yvar_ref    (m, m)   (1/T) * [ sum_i eps_i eps_i^T + C Psqrt_i Psqrt_i^T C^T ]
    Scratch:
      kobs_ref    (T, n)        rows (K obs[j])^T, precomputed
      xs_ref      (T, n)        state history rows x_1 .. x_T
      pt_ref      ((T+1)*n, n)  stacked Psqrt_i^T, i = 0..T
    """
    T = obs_ref.shape[0]
    n = a_ref.shape[0]

    A = a_ref[...]
    C = c_ref[...]
    K = k_ref[...]
    AKC = A - jnp.dot(K, C, preferred_element_type=jnp.float32)          # (n, n)

    # Hoisted: Kobs[j] = (K obs[j])^T for all j — one (T,m)@(m,n) matmul.
    kobs_ref[...] = lax.dot_general(
        obs_ref[...], K, (((1,), (1,)), ((), ())),
        preferred_element_type=jnp.float32)                              # (T, n)

    # History block 0 = Psqrt0^T.
    Pt0 = psqrt0t_ref[...]                                               # (n, n)
    pt_ref[0:n, :] = Pt0

    def body(i, carry):
        x_row, Pt = carry
        # "previous observation" index: i-1 wraps to T-1 at i == 0, matching
        # torch's negative indexing observations[i-1].
        prev = jnp.where(i == 0, T - 1, i - 1)
        # x_{i+1} = (A - K C) x_i + K obs[i-1]     (row form: x @ M^T)
        x_row = (lax.dot_general(x_row, AKC, (((1,), (1,)), ((), ())),
                                 preferred_element_type=jnp.float32)
                 + kobs_ref[pl.ds(prev, 1), :])                          # (1, n)
        # Psqrt_{i+1}^T = Psqrt_i^T (A - K C)^T
        Pt = lax.dot_general(Pt, AKC, (((1,), (1,)), ((), ())),
                             preferred_element_type=jnp.float32)         # (n, n)
        # Record history; epsilon / covariance terms are computed after the loop.
        xs_ref[pl.ds(i, 1), :] = x_row
        pt_ref[pl.ds(pl.multiple_of((i + 1) * n, n), n), :] = Pt
        return x_row, Pt

    x0_row = x0_ref[...]                                                 # (1, n)
    lax.fori_loop(0, T, body, (x0_row, Pt0),
                  unroll=True if T <= 32 else 8)

    # ---- Hoisted, MXU-friendly post-loop reductions ----
    O = obs_ref[...]                                                     # (T, m)
    # Ypred[i] = (C x_{i+1})^T  for all i — one (T,n)@(n,m) matmul.
    Ypred = lax.dot_general(xs_ref[...], C, (((1,), (1,)), ((), ())),
                            preferred_element_type=jnp.float32)          # (T, m)
    Eloop = O - Ypred                                                    # (T, m)
    EtE = lax.dot_general(Eloop, Eloop, (((0,), (0,)), ((), ())),
                          preferred_element_type=jnp.float32)            # (m, m)
    # Initial innovation term: obs[0] obs[0]^T (raw obs[0], as in the reference).
    o0 = O[0:1, :]
    E0 = lax.dot_general(o0, o0, (((0,), (0,)), ((), ())),
                         preferred_element_type=jnp.float32)             # (m, m)
    # S = sum_i C Psqrt_i Psqrt_i^T C^T  via the stacked history:
    #   G block i = Psqrt_i^T C^T = (C Psqrt_i)^T ;  S = G^T G.
    G = lax.dot_general(pt_ref[...], C, (((1,), (1,)), ((), ())),
                        preferred_element_type=jnp.float32)              # ((T+1)n, m)
    S = lax.dot_general(G, G, (((0,), (0,)), ((), ())),
                        preferred_element_type=jnp.float32)              # (m, m)

    yvar_ref[...] = (E0 + EtE + S) * (1.0 / T)


@functools.partial(jax.jit, static_argnames=())
def differentiable_kf_forward(A, C, K, x0, Psqrt0, observations):
    """JAX/Pallas equivalent of DifferentiableKF.forward(observations)."""
    A = A.astype(jnp.float32)
    C = C.astype(jnp.float32)
    K = K.astype(jnp.float32)
    x0 = x0.astype(jnp.float32)
    Psqrt0 = Psqrt0.astype(jnp.float32)
    obs = observations.astype(jnp.float32)

    n = A.shape[0]
    m = C.shape[0]
    T = obs.shape[0]

    x0_row = x0.reshape(1, n)
    Psqrt0_T = Psqrt0.T  # kernel carries / stacks Psqrt transposed

    yvar = pl.pallas_call(
        kf_kernel,
        out_shape=jax.ShapeDtypeStruct((m, m), jnp.float32),
        grid=(1,),
        in_specs=[
            pl.BlockSpec((n, n), lambda i: (0, 0)),   # A
            pl.BlockSpec((m, n), lambda i: (0, 0)),   # C
            pl.BlockSpec((n, m), lambda i: (0, 0)),   # K
            pl.BlockSpec((1, n), lambda i: (0, 0)),   # x0 (row)
            pl.BlockSpec((n, n), lambda i: (0, 0)),   # chol(P0)^T
            pl.BlockSpec((T, m), lambda i: (0, 0)),   # observations
        ],
        out_specs=pl.BlockSpec((m, m), lambda i: (0, 0)),
        scratch_shapes=[
            pltpu.VMEM((T, n), jnp.float32),            # Kobs rows
            pltpu.VMEM((T, n), jnp.float32),            # state history x_1..x_T
            pltpu.VMEM(((T + 1) * n, n), jnp.float32),  # stacked Psqrt^T history
        ],
        compiler_params=pltpu.CompilerParams(
            dimension_semantics=("arbitrary",),
            vmem_limit_bytes=64 * 1024 * 1024),
    )(A, C, K, x0_row, Psqrt0_T, obs)

    # TODO(synk): torch.slogdet (LU-based log-determinant) has no clean Pallas
    # TPU equivalent for a general matrix; done in plain JAX on the (m, m) output.
    loss = jnp.linalg.slogdet(yvar)[1]
    return loss


def _kf_reference(A, C, K, x0, Psqrt0, obs):
    """Pure-JAX transcription of the PyTorch reference loop."""
    T = obs.shape[0]
    AKC = A - K @ C
    eps = obs[0]
    Psqrt = Psqrt0
    x = x0
    yvar = jnp.outer(eps, eps) + C @ Psqrt @ Psqrt.T @ C.T
    for i in range(T):
        Psqrt = AKC @ Psqrt
        x = AKC @ x + K @ obs[i - 1]          # obs[-1] == obs[T-1], like torch
        ypred = C @ x
        eps = obs[i] - ypred
        yvar = yvar + jnp.outer(eps, eps) + C @ Psqrt @ Psqrt.T @ C.T
    yvar = yvar / T
    return jnp.linalg.slogdet(yvar)[1]


if __name__ == "__main__":
    # Small, deterministic synthetic problem: state dim n=8, obs dim m=8, T=8.
    n, m, T = 8, 8, 8
    key = jax.random.PRNGKey(0)
    k_a, k_c, k_k, k_x0, k_p0, k_obs = jax.random.split(key, 6)

    A = 0.3 * jax.random.normal(k_a, (n, n), dtype=jnp.float32)
    C = 0.3 * jax.random.normal(k_c, (m, n), dtype=jnp.float32)
    K = 0.1 * jax.random.normal(k_k, (n, m), dtype=jnp.float32)
    x0 = jax.random.normal(k_x0, (n,), dtype=jnp.float32)

    B = jax.random.normal(k_p0, (n, n), dtype=jnp.float32)
    P0 = B @ B.T + n * jnp.eye(n, dtype=jnp.float32)        # SPD
    Psqrt0 = jnp.linalg.cholesky(P0).astype(jnp.float32)     # == torch.cholesky(P0)

    observations = jax.random.normal(k_obs, (T, m), dtype=jnp.float32)

    loss = differentiable_kf_forward(A, C, K, x0, Psqrt0, observations)
    loss = jax.block_until_ready(loss)
    assert jnp.isfinite(loss), f"non-finite loss: {loss}"

    loss_ref = _kf_reference(A, C, K, x0, Psqrt0, observations)
    assert jnp.allclose(loss, loss_ref, rtol=1e-2, atol=1e-2), (
        f"mismatch: pallas={loss} ref={loss_ref}")

    print("KERNEL_OK")
</pallas_src>

<mosaic_0001>
module attributes {stable_mosaic.version = 11 : i64} {
  func.func @kf_kernel(%arg0: i32, %arg1: memref<8x8xf32, #tpu.memory_space<vmem>>, %arg2: memref<8x8xf32, #tpu.memory_space<vmem>>, %arg3: memref<8x8xf32, #tpu.memory_space<vmem>>, %arg4: memref<1x8xf32, #tpu.memory_space<vmem>>, %arg5: memref<8x8xf32, #tpu.memory_space<vmem>>, %arg6: memref<8x8xf32, #tpu.memory_space<vmem>>, %arg7: memref<8x8xf32, #tpu.memory_space<vmem>>, %arg8: memref<8x8xf32, #tpu.memory_space<vmem>>, %arg9: memref<8x8xf32, #tpu.memory_space<vmem>>, %arg10: memref<72x8xf32, #tpu.memory_space<vmem>>) attributes {dimension_semantics = [#tpu.dimension_semantics<arbitrary>], iteration_bounds = array<i64: 1>, scalar_prefetch = 0 : i64, scratch_operands = 3 : i64, tpu.core_type = #tpu.core_type<tc>, window_params = [{pipeline_mode = #tpu.pipeline_mode<synchronous>, transform_indices = @transform_0, window_bounds = array<i64: 8, 8>}, {pipeline_mode = #tpu.pipeline_mode<synchronous>, transform_indices = @transform_1, window_bounds = array<i64: 8, 8>}, {pipeline_mode = #tpu.pipeline_mode<synchronous>, transform_indices = @transform_2, window_bounds = array<i64: 8, 8>}, {pipeline_mode = #tpu.pipeline_mode<synchronous>, transform_indices = @transform_3, window_bounds = array<i64: 1, 8>}, {pipeline_mode = #tpu.pipeline_mode<synchronous>, transform_indices = @transform_4, window_bounds = array<i64: 8, 8>}, {pipeline_mode = #tpu.pipeline_mode<synchronous>, transform_indices = @transform_5, window_bounds = array<i64: 8, 8>}, {pipeline_mode = #tpu.pipeline_mode<synchronous>, transform_indices = @transform_6, window_bounds = array<i64: 8, 8>}]} {
    %c0 = arith.constant 0 : index
    %c0_0 = arith.constant 0 : index
    %0 = vector.load %arg1[%c0, %c0_0] : memref<8x8xf32, #tpu.memory_space<vmem>>, vector<8x8xf32>
    %c0_1 = arith.constant 0 : index
    %c0_2 = arith.constant 0 : index
    %1 = vector.load %arg2[%c0_1, %c0_2] : memref<8x8xf32, #tpu.memory_space<vmem>>, vector<8x8xf32>
    %c0_3 = arith.constant 0 : index
    %c0_4 = arith.constant 0 : index
    %2 = vector.load %arg3[%c0_3, %c0_4] : memref<8x8xf32, #tpu.memory_space<vmem>>, vector<8x8xf32>
    %cst = arith.constant dense<0.000000e+00> : vector<8x8xf32>
    %3 = tpu.matmul %2, %1, %cst {dimension_numbers = #tpu.dot_dimension_numbers<[1], [0], [0], [1], [0, 0, 1, 1], [], []>} : vector<8x8xf32>, vector<8x8xf32>, vector<8x8xf32> -> vector<8x8xf32>
    %4 = arith.subf %0, %3 : vector<8x8xf32>
    %c0_5 = arith.constant 0 : index
    %c0_6 = arith.constant 0 : index
    %5 = vector.load %arg6[%c0_5, %c0_6] : memref<8x8xf32, #tpu.memory_space<vmem>>, vector<8x8xf32>
    %cst_7 = arith.constant dense<0.000000e+00> : vector<8x8xf32>
    %6 = tpu.matmul %5, %2, %cst_7 {dimension_numbers = #tpu.dot_dimension_numbers<[1], [1], [0], [0], [0, 0, 1, 0], [], []>} : vector<8x8xf32>, vector<8x8xf32>, vector<8x8xf32> -> vector<8x8xf32>
    %c0_8 = arith.constant 0 : index
    %c0_9 = arith.constant 0 : index
    %7 = vector.load %arg8[%c0_8, %c0_9] : memref<8x8xf32, #tpu.memory_space<vmem>>, vector<8x8xf32>
    tpu.vector_store %arg8[%c0_8, %c0_9], %6 {strides = array<i32>} : memref<8x8xf32, #tpu.memory_space<vmem>>, vector<8x8xf32>,
    %c0_10 = arith.constant 0 : index
    %c0_11 = arith.constant 0 : index
    %8 = vector.load %arg5[%c0_10, %c0_11] : memref<8x8xf32, #tpu.memory_space<vmem>>, vector<8x8xf32>
    %c0_12 = arith.constant 0 : index
    %c0_13 = arith.constant 0 : index
    %9 = vector.load %arg10[%c0_12, %c0_13] : memref<72x8xf32, #tpu.memory_space<vmem>>, vector<8x8xf32>
    tpu.vector_store %arg10[%c0_12, %c0_13], %8 {strides = array<i32>} : memref<72x8xf32, #tpu.memory_space<vmem>>, vector<8x8xf32>,
    %c0_14 = arith.constant 0 : index
    %c0_15 = arith.constant 0 : index
    %10 = vector.load %arg4[%c0_14, %c0_15] : memref<1x8xf32, #tpu.memory_space<vmem>>, vector<1x8xf32>
    %c0_i32 = arith.constant 0 : i32
    %c0_i32_16 = arith.constant 0 : i32
    %11 = arith.cmpi eq, %c0_i32, %c0_i32_16 : i32
    %c1_i32 = arith.constant 1 : i32
    %12 = arith.subi %c0_i32, %c1_i32 : i32
    %c7_i32 = arith.constant 7 : i32
    %13 = arith.select %11, %c7_i32, %12 : i32
    %cst_17 = arith.constant dense<0.000000e+00> : vector<1x8xf32>
    %14 = tpu.matmul %10, %4, %cst_17 {dimension_numbers = #tpu.dot_dimension_numbers<[1], [1], [0], [0], [0, 0, 1, 0], [], []>} : vector<1x8xf32>, vector<8x8xf32>, vector<1x8xf32> -> vector<1x8xf32>
    %15 = arith.index_cast %13 : i32 to index
    %c0_18 = arith.constant 0 : index
    %16 = vector.load %arg8[%15, %c0_18] : memref<8x8xf32, #tpu.memory_space<vmem>>, vector<1x8xf32>
    %17 = arith.addf %14, %16 : vector<1x8xf32>
    %cst_19 = arith.constant dense<0.000000e+00> : vector<8x8xf32>
    %18 = tpu.matmul %8, %4, %cst_19 {dimension_numbers = #tpu.dot_dimension_numbers<[1], [1], [0], [0], [0, 0, 1, 0], [], []>} : vector<8x8xf32>, vector<8x8xf32>, vector<8x8xf32> -> vector<8x8xf32>
    %19 = arith.index_cast %c0_i32 : i32 to index
    %c0_20 = arith.constant 0 : index
    %20 = vector.load %arg9[%19, %c0_20] : memref<8x8xf32, #tpu.memory_space<vmem>>, vector<1x8xf32>
    tpu.vector_store %arg9[%19, %c0_20], %17 {strides = array<i32>} : memref<8x8xf32, #tpu.memory_space<vmem>>, vector<1x8xf32>,
    %c1_i32_21 = arith.constant 1 : i32
    %21 = arith.addi %c0_i32, %c1_i32_21 : i32
    %c8_i32 = arith.constant 8 : i32
    %22 = arith.muli %21, %c8_i32 : i32
    %23 = tpu.assume_multiple %22, 8 : i32
    %24 = arith.index_cast %23 : i32 to index
    %c0_22 = arith.constant 0 : index
    %25 = vector.load %arg10[%24, %c0_22] : memref<72x8xf32, #tpu.memory_space<vmem>>, vector<8x8xf32>
    tpu.vector_store %arg10[%24, %c0_22], %18 {strides = array<i32>} : memref<72x8xf32, #tpu.memory_space<vmem>>, vector<8x8xf32>,
    %c1_i32_23 = arith.constant 1 : i32
    %c0_i32_24 = arith.constant 0 : i32
    %26 = arith.cmpi eq, %c1_i32_23, %c0_i32_24 : i32
    %c1_i32_25 = arith.constant 1 : i32
    %27 = arith.subi %c1_i32_23, %c1_i32_25 : i32
    %c7_i32_26 = arith.constant 7 : i32
    %28 = arith.select %26, %c7_i32_26, %27 : i32
    %cst_27 = arith.constant dense<0.000000e+00> : vector<1x8xf32>
    %29 = tpu.matmul %17, %4, %cst_27 {dimension_numbers = #tpu.dot_dimension_numbers<[1], [1], [0], [0], [0, 0, 1, 0], [], []>} : vector<1x8xf32>, vector<8x8xf32>, vector<1x8xf32> -> vector<1x8xf32>
    %30 = arith.index_cast %28 : i32 to index
    %c0_28 = arith.constant 0 : index
    %31 = vector.load %arg8[%30, %c0_28] : memref<8x8xf32, #tpu.memory_space<vmem>>, vector<1x8xf32>
    %32 = arith.addf %29, %31 : vector<1x8xf32>
    %cst_29 = arith.constant dense<0.000000e+00> : vector<8x8xf32>
    %33 = tpu.matmul %18, %4, %cst_29 {dimension_numbers = #tpu.dot_dimension_numbers<[1], [1], [0], [0], [0, 0, 1, 0], [], []>} : vector<8x8xf32>, vector<8x8xf32>, vector<8x8xf32> -> vector<8x8xf32>
    %34 = arith.index_cast %c1_i32_23 : i32 to index
    %c0_30 = arith.constant 0 : index
    %35 = vector.load %arg9[%34, %c0_30] : memref<8x8xf32, #tpu.memory_space<vmem>>, vector<1x8xf32>
    tpu.vector_store %arg9[%34, %c0_30], %32 {strides = array<i32>} : memref<8x8xf32, #tpu.memory_space<vmem>>, vector<1x8xf32>,
    %c1_i32_31 = arith.constant 1 : i32
    %36 = arith.addi %c1_i32_23, %c1_i32_31 : i32
    %c8_i32_32 = arith.constant 8 : i32
    %37 = arith.muli %36, %c8_i32_32 : i32
    %38 = tpu.assume_multiple %37, 8 : i32
    %39 = arith.index_cast %38 : i32 to index
    %c0_33 = arith.constant 0 : index
    %40 = vector.load %arg10[%39, %c0_33] : memref<72x8xf32, #tpu.memory_space<vmem>>, vector<8x8xf32>
    tpu.vector_store %arg10[%39, %c0_33], %33 {strides = array<i32>} : memref<72x8xf32, #tpu.memory_space<vmem>>, vector<8x8xf32>,
    %c2_i32 = arith.constant 2 : i32
    %c0_i32_34 = arith.constant 0 : i32
    %41 = arith.cmpi eq, %c2_i32, %c0_i32_34 : i32
    %c1_i32_35 = arith.constant 1 : i32
    %42 = arith.subi %c2_i32, %c1_i32_35 : i32
    %c7_i32_36 = arith.constant 7 : i32
    %43 = arith.select %41, %c7_i32_36, %42 : i32
    %cst_37 = arith.constant dense<0.000000e+00> : vector<1x8xf32>
    %44 = tpu.matmul %32, %4, %cst_37 {dimension_numbers = #tpu.dot_dimension_numbers<[1], [1], [0], [0], [0, 0, 1, 0], [], []>} : vector<1x8xf32>, vector<8x8xf32>, vector<1x8xf32> -> vector<1x8xf32>
    %45 = arith.index_cast %43 : i32 to index
    %c0_38 = arith.constant 0 : index
    %46 = vector.load %arg8[%45, %c0_38] : memref<8x8xf32, #tpu.memory_space<vmem>>, vector<1x8xf32>
    %47 = arith.addf %44, %46 : vector<1x8xf32>
    %cst_39 = arith.constant dense<0.000000e+00> : vector<8x8xf32>
    %48 = tpu.matmul %33, %4, %cst_39 {dimension_numbers = #tpu.dot_dimension_numbers<[1], [1], [0], [0], [0, 0, 1, 0], [], []>} : vector<8x8xf32>, vector<8x8xf32>, vector<8x8xf32> -> vector<8x8xf32>
    %49 = arith.index_cast %c2_i32 : i32 to index
    %c0_40 = arith.constant 0 : index
    %50 = vector.load %arg9[%49, %c0_40] : memref<8x8xf32, #tpu.memory_space<vmem>>, vector<1x8xf32>
    tpu.vector_store %arg9[%49, %c0_40], %47 {strides = array<i32>} : memref<8x8xf32, #tpu.memory_space<vmem>>, vector<1x8xf32>,
    %c1_i32_41 = arith.constant 1 : i32
    %51 = arith.addi %c2_i32, %c1_i32_41 : i32
    %c8_i32_42 = arith.constant 8 : i32
    %52 = arith.muli %51, %c8_i32_42 : i32
    %53 = tpu.assume_multiple %52, 8 : i32
    %54 = arith.index_cast %53 : i32 to index
    %c0_43 = arith.constant 0 : index
    %55 = vector.load %arg10[%54, %c0_43] : memref<72x8xf32, #tpu.memory_space<vmem>>, vector<8x8xf32>
    tpu.vector_store %arg10[%54, %c0_43], %48 {strides = array<i32>} : memref<72x8xf32, #tpu.memory_space<vmem>>, vector<8x8xf32>,
    %c3_i32 = arith.constant 3 : i32
    %c0_i32_44 = arith.constant 0 : i32
    %56 = arith.cmpi eq, %c3_i32, %c0_i32_44 : i32
    %c1_i32_45 = arith.constant 1 : i32
    %57 = arith.subi %c3_i32, %c1_i32_45 : i32
    %c7_i32_46 = arith.constant 7 : i32
    %58 = arith.select %56, %c7_i32_46, %57 : i32
    %cst_47 = arith.constant dense<0.000000e+00> : vector<1x8xf32>
    %59 = tpu.matmul %47, %4, %cst_47 {dimension_numbers = #tpu.dot_dimension_numbers<[1], [1], [0], [0], [0, 0, 1, 0], [], []>} : vector<1x8xf32>, vector<8x8xf32>, vector<1x8xf32> -> vector<1x8xf32>
    %60 = arith.index_cast %58 : i32 to index
    %c0_48 = arith.constant 0 : index
    %61 = vector.load %arg8[%60, %c0_48] : memref<8x8xf32, #tpu.memory_space<vmem>>, vector<1x8xf32>
    %62 = arith.addf %59, %61 : vector<1x8xf32>
    %cst_49 = arith.constant dense<0.000000e+00> : vector<8x8xf32>
    %63 = tpu.matmul %48, %4, %cst_49 {dimension_numbers = #tpu.dot_dimension_numbers<[1], [1], [0], [0], [0, 0, 1, 0], [], []>} : vector<8x8xf32>, vector<8x8xf32>, vector<8x8xf32> -> vector<8x8xf32>
    %64 = arith.index_cast %c3_i32 : i32 to index
    %c0_50 = arith.constant 0 : index
    %65 = vector.load %arg9[%64, %c0_50] : memref<8x8xf32, #tpu.memory_space<vmem>>, vector<1x8xf32>
    tpu.vector_store %arg9[%64, %c0_50], %62 {strides = array<i32>} : memref<8x8xf32, #tpu.memory_space<vmem>>, vector<1x8xf32>,
    %c1_i32_51 = arith.constant 1 : i32
    %66 = arith.addi %c3_i32, %c1_i32_51 : i32
    %c8_i32_52 = arith.constant 8 : i32
    %67 = arith.muli %66, %c8_i32_52 : i32
    %68 = tpu.assume_multiple %67, 8 : i32
    %69 = arith.index_cast %68 : i32 to index
    %c0_53 = arith.constant 0 : index
    %70 = vector.load %arg10[%69, %c0_53] : memref<72x8xf32, #tpu.memory_space<vmem>>, vector<8x8xf32>
    tpu.vector_store %arg10[%69, %c0_53], %63 {strides = array<i32>} : memref<72x8xf32, #tpu.memory_space<vmem>>, vector<8x8xf32>,
    %c4_i32 = arith.constant 4 : i32
    %c0_i32_54 = arith.constant 0 : i32
    %71 = arith.cmpi eq, %c4_i32, %c0_i32_54 : i32
    %c1_i32_55 = arith.constant 1 : i32
    %72 = arith.subi %c4_i32, %c1_i32_55 : i32
    %c7_i32_56 = arith.constant 7 : i32
    %73 = arith.select %71, %c7_i32_56, %72 : i32
    %cst_57 = arith.constant dense<0.000000e+00> : vector<1x8xf32>
    %74 = tpu.matmul %62, %4, %cst_57 {dimension_numbers = #tpu.dot_dimension_numbers<[1], [1], [0], [0], [0, 0, 1, 0], [], []>} : vector<1x8xf32>, vector<8x8xf32>, vector<1x8xf32> -> vector<1x8xf32>
    %75 = arith.index_cast %73 : i32 to index
    %c0_58 = arith.constant 0 : index
    %76 = vector.load %arg8[%75, %c0_58] : memref<8x8xf32, #tpu.memory_space<vmem>>, vector<1x8xf32>
    %77 = arith.addf %74, %76 : vector<1x8xf32>
    %cst_59 = arith.constant dense<0.000000e+00> : vector<8x8xf32>
    %78 = tpu.matmul %63, %4, %cst_59 {dimension_numbers = #tpu.dot_dimension_numbers<[1], [1], [0], [0], [0, 0, 1, 0], [], []>} : vector<8x8xf32>, vector<8x8xf32>, vector<8x8xf32> -> vector<8x8xf32>
    %79 = arith.index_cast %c4_i32 : i32 to index
    %c0_60 = arith.constant 0 : index
    %80 = vector.load %arg9[%79, %c0_60] : memref<8x8xf32, #tpu.memory_space<vmem>>, vector<1x8xf32>
    tpu.vector_store %arg9[%79, %c0_60], %77 {strides = array<i32>} : memref<8x8xf32, #tpu.memory_space<vmem>>, vector<1x8xf32>,
    %c1_i32_61 = arith.constant 1 : i32
    %81 = arith.addi %c4_i32, %c1_i32_61 : i32
    %c8_i32_62 = arith.constant 8 : i32
    %82 = arith.muli %81, %c8_i32_62 : i32
    %83 = tpu.assume_multiple %82, 8 : i32
    %84 = arith.index_cast %83 : i32 to index
    %c0_63 = arith.constant 0 : index
    %85 = vector.load %arg10[%84, %c0_63] : memref<72x8xf32, #tpu.memory_space<vmem>>, vector<8x8xf32>
    tpu.vector_store %arg10[%84, %c0_63], %78 {strides = array<i32>} : memref<72x8xf32, #tpu.memory_space<vmem>>, vector<8x8xf32>,
    %c5_i32 = arith.constant 5 : i32
    %c0_i32_64 = arith.constant 0 : i32
    %86 = arith.cmpi eq, %c5_i32, %c0_i32_64 : i32
    %c1_i32_65 = arith.constant 1 : i32
    %87 = arith.subi %c5_i32, %c1_i32_65 : i32
    %c7_i32_66 = arith.constant 7 : i32
    %88 = arith.select %86, %c7_i32_66, %87 : i32
    %cst_67 = arith.constant dense<0.000000e+00> : vector<1x8xf32>
    %89 = tpu.matmul %77, %4, %cst_67 {dimension_numbers = #tpu.dot_dimension_numbers<[1], [1], [0], [0], [0, 0, 1, 0], [], []>} : vector<1x8xf32>, vector<8x8xf32>, vector<1x8xf32> -> vector<1x8xf32>
    %90 = arith.index_cast %88 : i32 to index
    %c0_68 = arith.constant 0 : index
    %91 = vector.load %arg8[%90, %c0_68] : memref<8x8xf32, #tpu.memory_space<vmem>>, vector<1x8xf32>
    %92 = arith.addf %89, %91 : vector<1x8xf32>
    %cst_69 = arith.constant dense<0.000000e+00> : vector<8x8xf32>
    %93 = tpu.matmul %78, %4, %cst_69 {dimension_numbers = #tpu.dot_dimension_numbers<[1], [1], [0], [0], [0, 0, 1, 0], [], []>} : vector<8x8xf32>, vector<8x8xf32>, vector<8x8xf32> -> vector<8x8xf32>
    %94 = arith.index_cast %c5_i32 : i32 to index
    %c0_70 = arith.constant 0 : index
    %95 = vector.load %arg9[%94, %c0_70] : memref<8x8xf32, #tpu.memory_space<vmem>>, vector<1x8xf32>
    tpu.vector_store %arg9[%94, %c0_70], %92 {strides = array<i32>} : memref<8x8xf32, #tpu.memory_space<vmem>>, vector<1x8xf32>,
    %c1_i32_71 = arith.constant 1 : i32
    %96 = arith.addi %c5_i32, %c1_i32_71 : i32
    %c8_i32_72 = arith.constant 8 : i32
    %97 = arith.muli %96, %c8_i32_72 : i32
    %98 = tpu.assume_multiple %97, 8 : i32
    %99 = arith.index_cast %98 : i32 to index
    %c0_73 = arith.constant 0 : index
    %100 = vector.load %arg10[%99, %c0_73] : memref<72x8xf32, #tpu.memory_space<vmem>>, vector<8x8xf32>
    tpu.vector_store %arg10[%99, %c0_73], %93 {strides = array<i32>} : memref<72x8xf32, #tpu.memory_space<vmem>>, vector<8x8xf32>,
    %c6_i32 = arith.constant 6 : i32
    %c0_i32_74 = arith.constant 0 : i32
    %101 = arith.cmpi eq, %c6_i32, %c0_i32_74 : i32
    %c1_i32_75 = arith.constant 1 : i32
    %102 = arith.subi %c6_i32, %c1_i32_75 : i32
    %c7_i32_76 = arith.constant 7 : i32
    %103 = arith.select %101, %c7_i32_76, %102 : i32
    %cst_77 = arith.constant dense<0.000000e+00> : vector<1x8xf32>
    %104 = tpu.matmul %92, %4, %cst_77 {dimension_numbers = #tpu.dot_dimension_numbers<[1], [1], [0], [0], [0, 0, 1, 0], [], []>} : vector<1x8xf32>, vector<8x8xf32>, vector<1x8xf32> -> vector<1x8xf32>
    %105 = arith.index_cast %103 : i32 to index
    %c0_78 = arith.constant 0 : index
    %106 = vector.load %arg8[%105, %c0_78] : memref<8x8xf32, #tpu.memory_space<vmem>>, vector<1x8xf32>
    %107 = arith.addf %104, %106 : vector<1x8xf32>
    %cst_79 = arith.constant dense<0.000000e+00> : vector<8x8xf32>
    %108 = tpu.matmul %93, %4, %cst_79 {dimension_numbers = #tpu.dot_dimension_numbers<[1], [1], [0], [0], [0, 0, 1, 0], [], []>} : vector<8x8xf32>, vector<8x8xf32>, vector<8x8xf32> -> vector<8x8xf32>
    %109 = arith.index_cast %c6_i32 : i32 to index
    %c0_80 = arith.constant 0 : index
    %110 = vector.load %arg9[%109, %c0_80] : memref<8x8xf32, #tpu.memory_space<vmem>>, vector<1x8xf32>
    tpu.vector_store %arg9[%109, %c0_80], %107 {strides = array<i32>} : memref<8x8xf32, #tpu.memory_space<vmem>>, vector<1x8xf32>,
    %c1_i32_81 = arith.constant 1 : i32
    %111 = arith.addi %c6_i32, %c1_i32_81 : i32
    %c8_i32_82 = arith.constant 8 : i32
    %112 = arith.muli %111, %c8_i32_82 : i32
    %113 = tpu.assume_multiple %112, 8 : i32
    %114 = arith.index_cast %113 : i32 to index
    %c0_83 = arith.constant 0 : index
    %115 = vector.load %arg10[%114, %c0_83] : memref<72x8xf32, #tpu.memory_space<vmem>>, vector<8x8xf32>
    tpu.vector_store %arg10[%114, %c0_83], %108 {strides = array<i32>} : memref<72x8xf32, #tpu.memory_space<vmem>>, vector<8x8xf32>,
    %c7_i32_84 = arith.constant 7 : i32
    %c0_i32_85 = arith.constant 0 : i32
    %116 = arith.cmpi eq, %c7_i32_84, %c0_i32_85 : i32
    %c1_i32_86 = arith.constant 1 : i32
    %117 = arith.subi %c7_i32_84, %c1_i32_86 : i32
    %c7_i32_87 = arith.constant 7 : i32
    %118 = arith.select %116, %c7_i32_87, %117 : i32
    %cst_88 = arith.constant dense<0.000000e+00> : vector<1x8xf32>
    %119 = tpu.matmul %107, %4, %cst_88 {dimension_numbers = #tpu.dot_dimension_numbers<[1], [1], [0], [0], [0, 0, 1, 0], [], []>} : vector<1x8xf32>, vector<8x8xf32>, vector<1x8xf32> -> vector<1x8xf32>
    %120 = arith.index_cast %118 : i32 to index
    %c0_89 = arith.constant 0 : index
    %121 = vector.load %arg8[%120, %c0_89] : memref<8x8xf32, #tpu.memory_space<vmem>>, vector<1x8xf32>
    %122 = arith.addf %119, %121 : vector<1x8xf32>
    %cst_90 = arith.constant dense<0.000000e+00> : vector<8x8xf32>
    %123 = tpu.matmul %108, %4, %cst_90 {dimension_numbers = #tpu.dot_dimension_numbers<[1], [1], [0], [0], [0, 0, 1, 0], [], []>} : vector<8x8xf32>, vector<8x8xf32>, vector<8x8xf32> -> vector<8x8xf32>
    %124 = arith.index_cast %c7_i32_84 : i32 to index
    %c0_91 = arith.constant 0 : index
    %125 = vector.load %arg9[%124, %c0_91] : memref<8x8xf32, #tpu.memory_space<vmem>>, vector<1x8xf32>
    tpu.vector_store %arg9[%124, %c0_91], %122 {strides = array<i32>} : memref<8x8xf32, #tpu.memory_space<vmem>>, vector<1x8xf32>,
    %c1_i32_92 = arith.constant 1 : i32
    %126 = arith.addi %c7_i32_84, %c1_i32_92 : i32
    %c8_i32_93 = arith.constant 8 : i32
    %127 = arith.muli %126, %c8_i32_93 : i32
    %128 = tpu.assume_multiple %127, 8 : i32
    %129 = arith.index_cast %128 : i32 to index
    %c0_94 = arith.constant 0 : index
    %130 = vector.load %arg10[%129, %c0_94] : memref<72x8xf32, #tpu.memory_space<vmem>>, vector<8x8xf32>
    tpu.vector_store %arg10[%129, %c0_94], %123 {strides = array<i32>} : memref<72x8xf32, #tpu.memory_space<vmem>>, vector<8x8xf32>,
    %c8_i32_95 = arith.constant 8 : i32
    %c0_96 = arith.constant 0 : index
    %c0_97 = arith.constant 0 : index
    %131 = vector.load %arg6[%c0_96, %c0_97] : memref<8x8xf32, #tpu.memory_space<vmem>>, vector<8x8xf32>
    %c0_98 = arith.constant 0 : index
    %c0_99 = arith.constant 0 : index
    %132 = vector.load %arg9[%c0_98, %c0_99] : memref<8x8xf32, #tpu.memory_space<vmem>>, vector<8x8xf32>
    %cst_100 = arith.constant dense<0.000000e+00> : vector<8x8xf32>
    %133 = tpu.matmul %132, %1, %cst_100 {dimension_numbers = #tpu.dot_dimension_numbers<[1], [1], [0], [0], [0, 0, 1, 0], [], []>} : vector<8x8xf32>, vector<8x8xf32>, vector<8x8xf32> -> vector<8x8xf32>
    %134 = arith.subf %131, %133 : vector<8x8xf32>
    %cst_101 = arith.constant dense<0.000000e+00> : vector<8x8xf32>
    %135 = tpu.matmul %134, %134, %cst_101 {dimension_numbers = #tpu.dot_dimension_numbers<[0], [0], [1], [1], [0, 1, 1, 1], [], []>} : vector<8x8xf32>, vector<8x8xf32>, vector<8x8xf32> -> vector<8x8xf32>
    %136 = vector.extract_strided_slice %131 {offsets = [0, 0], sizes = [1, 8], strides = [1, 1]} : vector<8x8xf32> to vector<1x8xf32>
    %cst_102 = arith.constant dense<0.000000e+00> : vector<8x8xf32>
    %137 = tpu.matmul %136, %136, %cst_102 {dimension_numbers = #tpu.dot_dimension_numbers<[0], [0], [1], [1], [0, 1, 1, 1], [], []>} : vector<1x8xf32>, vector<1x8xf32>, vector<8x8xf32> -> vector<8x8xf32>
    %c0_103 = arith.constant 0 : index
    %c0_104 = arith.constant 0 : index
    %138 = vector.load %arg10[%c0_103, %c0_104] : memref<72x8xf32, #tpu.memory_space<vmem>>, vector<72x8xf32>
    %cst_105 = arith.constant dense<0.000000e+00> : vector<72x8xf32>
    %139 = tpu.matmul %138, %1, %cst_105 {dimension_numbers = #tpu.dot_dimension_numbers<[1], [1], [0], [0], [0, 0, 1, 0], [], []>} : vector<72x8xf32>, vector<8x8xf32>, vector<72x8xf32> -> vector<72x8xf32>
    %cst_106 = arith.constant dense<0.000000e+00> : vector<8x8xf32>
    %140 = tpu.matmul %139, %139, %cst_106 {dimension_numbers = #tpu.dot_dimension_numbers<[0], [0], [1], [1], [0, 1, 1, 1], [], []>} : vector<72x8xf32>, vector<72x8xf32>, vector<8x8xf32> -> vector<8x8xf32>
    %141 = arith.addf %137, %135 : vector<8x8xf32>
    %142 = arith.addf %141, %140 : vector<8x8xf32>
    %cst_107 = arith.constant 1.250000e-01 : f32
    %143 = vector.broadcast %cst_107 : f32 to vector<8x8xf32>
    %144 = arith.mulf %142, %143 : vector<8x8xf32>
    %c0_108 = arith.constant 0 : index
    %c0_109 = arith.constant 0 : index
    %145 = vector.load %arg7[%c0_108, %c0_109] : memref<8x8xf32, #tpu.memory_space<vmem>>, vector<8x8xf32>
    tpu.vector_store %arg7[%c0_108, %c0_109], %144 {strides = array<i32>} : memref<8x8xf32, #tpu.memory_space<vmem>>, vector<8x8xf32>,
    return
  }
  func.func @transform_0(%arg0: i32) -> (i32, i32) {
    %c0_i32 = arith.constant 0 : i32
    %c0_i32_0 = arith.constant 0 : i32
    %c0_i32_1 = arith.constant 0 : i32
    return %c0_i32, %c0_i32_0 : i32, i32
  }
  func.func @transform_1(%arg0: i32) -> (i32, i32) {
    %c0_i32 = arith.constant 0 : i32
    %c0_i32_0 = arith.constant 0 : i32
    %c0_i32_1 = arith.constant 0 : i32
    return %c0_i32, %c0_i32_0 : i32, i32
  }
  func.func @transform_2(%arg0: i32) -> (i32, i32) {
    %c0_i32 = arith.constant 0 : i32
    %c0_i32_0 = arith.constant 0 : i32
    %c0_i32_1 = arith.constant 0 : i32
    return %c0_i32, %c0_i32_0 : i32, i32
  }
  func.func @transform_3(%arg0: i32) -> (i32, i32) {
    %c0_i32 = arith.constant 0 : i32
    %c0_i32_0 = arith.constant 0 : i32
    %c0_i32_1 = arith.constant 0 : i32
    return %c0_i32, %c0_i32_0 : i32, i32
  }
  func.func @transform_4(%arg0: i32) -> (i32, i32) {
    %c0_i32 = arith.constant 0 : i32
    %c0_i32_0 = arith.constant 0 : i32
    %c0_i32_1 = arith.constant 0 : i32
    return %c0_i32, %c0_i32_0 : i32, i32
  }
  func.func @transform_5(%arg0: i32) -> (i32, i32) {
    %c0_i32 = arith.constant 0 : i32
    %c0_i32_0 = arith.constant 0 : i32
    %c0_i32_1 = arith.constant 0 : i32
    return %c0_i32, %c0_i32_0 : i32, i32
  }
  func.func @transform_6(%arg0: i32) -> (i32, i32) {
    %c0_i32 = arith.constant 0 : i32
    %c0_i32_0 = arith.constant 0 : i32
    %c0_i32_1 = arith.constant 0 : i32
    return %c0_i32, %c0_i32_0 : i32, i32
  }
}

</mosaic_0001>

<bundles_post_ra>
// kernel: custom-call.2
= control target key start
LH: loop header
LB: loop body
LE: loop exit
PB: predicated region body
PF: predicated region fallthrough
CT: control target
= control target key end

     0   :  { %5 = vsyncpa [#allocation4], 0  ;;  %s739_s0 = inlined_call_operand.vmem [shape: f32[8,8], index: 0, kind: input, shape index: {}]   ;;  %s740_s1 = inlined_call_operand.vmem [shape: f32[8,8], index: 1, kind: output, shape index: {0}]   ;;  %s741_s2 = inlined_call_operand.hbm [shape: s32[8], index: 2, kind: output, shape index: {1}]   ;;  %s742_s3 = inlined_call_operand.hbm [shape: s32[8], index: 3, kind: output, shape index: {2}]  }
   0x1   :  { %6 = vsyncpa [#allocation7], 0  ;;  %s642_s12 = smov [#allocation0]   ;;  %s646_s15 = smov %s739_s0  }
   0x2 LB: > { %v50_v0 = vld [vmem:[%s648_s15] sm:$0xff]  ;;  %s52_s15 = scalar_lea.vmem %s648_s15, 8   ;;  %s648_s15 = sphi %s646_s15, %s52_s15   ;;  %s644_s12 = sphi %s642_s12, %s53_s12  }
   0x3   : > { %51 = vst [vmem:[%s644_s12] sm:$0xff] %v50_v0  ;;  %s53_s12 = scalar_lea.vmem %s644_s12, 8   ;;  %p47_p0 = scmp.gt.s32.totalorder %s52_s15, %s739_s0 }
   0x4   :  { %v66_v2 = vlaneseq (%p47_p0)  ;;  %v662_v3 = vmov (%p47_p0), 0   ;;  %s695_s18 = smov (%p47_p0), 0  }
   0x5   :  { %49 = sbr.rel (!%p47_p0) target bundleno = 2 (0x2), region = 123  ;;  %65 = vst [vmem:[#allocation2] sm:$0x1] (%p47_p0), %v662_v3 }
   0x6   :  { %v692_v4 = vshrl.u32 (%p47_p0), %v66_v2, 7 }
   0x8   :  { %70 = vst [vmem:[#allocation8] sm:$0xff] (%p47_p0), %v692_v4 }
   0xa   :  { %v63_v1 = vld [vmem:[#allocation0] sm:$0xff] }
   0xb   :  { %64 = vst [vmem:[#allocation1] sm:$0xff] %v63_v1 }
   0xc LB: > { %v701_v7 = vstv %s652_s18  ;;  %s127_s0 = ssub.s32 128, %s652_s18  ;;  %v133_v38 = vand.u32 127, %v66_v2  ;;  %s139_s19 = scalar_lea.vmem [#allocation1], %s652_s18  ;;  %v136_v41 = vld [vmem:[#allocation2] ss:$0 sm:$0xff]  ;;  %s652_s18 = sphi %s695_s18, %s76_s18  }
   0xd   : > { %vm85_vm0 = vcmp.ge.s32.totalorder %v692_v4, %v701_v7  ;;  %s145_s22 = scalar_lea.vmem [#allocation8], %s652_s18  ;;  %vm165_vm12 = vcmp.gt.s32.totalorder %v692_v4, %v701_v7  ;;  %s76_s18 = sadd.s32 1, %s652_s18  }
   0xe   : > { %vm134_vm10 = vcmp.eq.s32.totalorder %v133_v38, %v701_v7  ;;  %p73_p1 = scmp.ge.s32.totalorder %s76_s18, 8  }
   0xf   : > { %v147_v43 = vld [vmem:[%s145_s22] ss:$0 sm:$0xff]  ;;  %s654_s26 = smov (%p73_p1), %s740_s1   ;;  %s658_s27 = smov (%p73_p1), [#allocation1]  }
  0x12   : > { %v81_v5 = vld [vmem:[#allocation1] sm:$0xff]  ;;  %v141_v39 = vld [vmem:[%s139_s19] ss:$0 sm:$0xff] }
  0x13   : > { %v82_v6 = vand.u32 2147483647, %v81_v5 }
  0x15   : > { %vm397_vm1 = vcmp.gt.f32.partialorder %v82_v6, -inf }
  0x16   : > { %vm89_vm2 = vmand %vm85_vm0, %vm397_vm1 }
  0x17   : > { %v90_v8 = vsel %vm89_vm2, %v692_v4, %v701_v7  ;;  %v91_v9 = vsel %vm89_vm2, %v82_v6, -inf  ;;  %vm182_vm2 = vmand %vm165_vm12, %vm134_vm10 }
  0x18   : > { %v92_v10 = vrot.slane %v91_v9, 1  ;;  %v93_v11 = vrot.slane %v90_v8, 1 }
  0x1a   : > { %vm94_vm3 = vcmp.ge.f32.partialorder %v92_v10, %v91_v9  ;;  %v97_v12 = vrot.slane %v92_v10, 1  ;;  %v98_v13 = vrot.slane %v93_v11, 1 }
  0x1b   : > { %v95_v14 = vsel %vm94_vm3, %v92_v10, %v91_v9  ;;  %v96_v15 = vsel %vm94_vm3, %v93_v11, %v90_v8  ;;  %vm157_vm3 = vcmp.gt.s32.totalorder %v133_v38, %v701_v7 }
  0x1c   : > { %vm99_vm4 = vcmp.ge.f32.partialorder %v97_v12, %v95_v14  ;;  %v102_v16 = vrot.slane %v97_v12, 1  ;;  %v103_v17 = vrot.slane %v98_v13, 1 }
  0x1d   : > { %v100_v18 = vsel %vm99_vm4, %v97_v12, %v95_v14  ;;  %v101_v19 = vsel %vm99_vm4, %v98_v13, %v96_v15 }
  0x1e   : > { %vm104_vm5 = vcmp.ge.f32.partialorder %v102_v16, %v100_v18  ;;  %v107_v20 = vrot.slane %v102_v16, 1  ;;  %v108_v21 = vrot.slane %v103_v17, 1 }
  0x1f   : > { %v105_v22 = vsel %vm104_vm5, %v102_v16, %v100_v18  ;;  %v106_v23 = vsel %vm104_vm5, %v103_v17, %v101_v19 }
  0x20   : > { %vm109_vm6 = vcmp.ge.f32.partialorder %v107_v20, %v105_v22  ;;  %v112_v24 = vrot.slane %v107_v20, 1  ;;  %v113_v25 = vrot.slane %v108_v21, 1 }
  0x21   : > { %v110_v26 = vsel %vm109_vm6, %v107_v20, %v105_v22  ;;  %v111_v27 = vsel %vm109_vm6, %v108_v21, %v106_v23 }
  0x22   : > { %vm114_vm7 = vcmp.ge.f32.partialorder %v112_v24, %v110_v26  ;;  %v117_v28 = vrot.slane %v112_v24, 1  ;;  %v118_v29 = vrot.slane %v113_v25, 1 }
  0x23   : > { %v115_v30 = vsel %vm114_vm7, %v112_v24, %v110_v26  ;;  %v116_v31 = vsel %vm114_vm7, %v113_v25, %v111_v27 }
  0x24   : > { %vm119_vm8 = vcmp.ge.f32.partialorder %v117_v28, %v115_v30  ;;  %v122_v32 = vrot.slane %v117_v28, 1  ;;  %v123_v33 = vrot.slane %v118_v29, 1 }
  0x25   : > { %v120_v34 = vsel %vm119_vm8, %v117_v28, %v115_v30  ;;  %v121_v35 = vsel %vm119_vm8, %v118_v29, %v116_v31 }
  0x26   : > { %vm124_vm9 = vcmp.ge.f32.partialorder %v122_v32, %v120_v34 }
  0x27   : > { %v126_v36 = vsel %vm124_vm9, %v123_v33, %v121_v35 }
  0x28   : > { %128 = vrot.lane.b32.xlu0 %v126_v36, %s127_s0 }
  0x9a   : > { %v129_v37 = vpop.permute.xlu0 %128 }
  0x9b   : > { %402 = vpush %v129_v37 }
  0xcc   : > { %s403_s20 = spop %402 }
  0xcd   : > { %v135_v40 = vstv %s403_s20  ;;  %s140_s21 = scalar_lea.vmem [#allocation1], %s403_s20  ;;  %s146_s23 = scalar_lea.vmem [#allocation8], %s403_s20 }
  0xce   : > { %v142_v42 = vld [vmem:[%s140_s21] ss:$0 sm:$0xff]  ;;  %v137_v45 = vsel %vm134_vm10, %v135_v40, %v136_v41 }
  0xcf   : > { %v148_v44 = vld [vmem:[%s146_s23] ss:$0 sm:$0xff]  ;;  %143 = vst [vmem:[%s140_s21] sm:$0x1] %v141_v39  ;;  %vm151_vm11 = vcmp.ne.f32.partialorder %v142_v42, 0.0  ;;  %v158_v61 = vsel %vm157_vm3, %v142_v42, 0.0 }
  0xd0   : > { %144 = vst [vmem:[%s139_s19] sm:$0x1] %v142_v42  ;;  %vm152_vm13 = vmand %vm134_vm10, %vm151_vm11 }
  0xd1   : > { %149 = vst [vmem:[%s146_s23] sm:$0x1] %v147_v43  ;;  %v153_v46 = vsel %vm152_vm13, %v142_v42, 1.0 }
  0xd2   : > { %150 = vst [vmem:[%s145_s22] sm:$0x1] %v148_v44  ;;  %v166_v47 = vsel %vm165_vm12, %v153_v46, 1.0 }
  0xd3   : > { %528 = vrcp.f32 %v166_v47  ;;  %138 = vst [vmem:[#allocation2] sm:$0x1] %v137_v45  ;;  %v178_v51 = vand.u32 2147483648, %v166_v47  ;;  %v176_v53 = vand.u32 2147483647, %v166_v47  ;;  %vm172_vm15 = vweird.f32 %v166_v47 }
  0xd5   : > { %v179_v55 = vor.u32 1.1754944e-38, %v178_v51  ;;  %vm177_vm1 = vcmp.eq.f32.partialorder %v176_v53, 8.507059e+37 }
  0xd7   : > { %v162_v57 = vld [vmem:[#allocation1] sm:$0xff] }
  0xd9   : > { %v529_v48 = vpop.eup %528  ;;  %v189_v1 = vld [vmem:[#allocation8] sm:$0xff] (%p73_p1) }
  0xda   : > { %v168_v49 = vmul.f32 %v529_v48, %v166_v47  ;;  %vm173_vm14 = vweird.f32 %v529_v48  ;;  %v240_v3 = vld [vmem:[#allocation2] sm:$0x1] (%p73_p1) }
  0xdb   : > { %vm174_vm0 = vmor %vm172_vm15, %vm173_vm14  ;;  %243 = vst [vmem:[#allocation3] sm:$0x1] (%p73_p1), %v240_v3 }
  0xdc   : > { %v169_v50 = vsub.f32 1.0, %v168_v49 }
  0xde   : > { %v170_v52 = vmul.f32 %v529_v48, %v169_v50 }
  0xe0   : > { %v171_v54 = vadd.f32 %v529_v48, %v170_v52 }
  0xe2   : > { %v175_v56 = vsel %vm174_vm0, %v529_v48, %v171_v54 }
  0xe3   : > { %v180_v58 = vsel %vm177_vm1, %v179_v55, %v175_v56 }
  0xe4   : > { %v181_v59 = vmul.f32 %v180_v58, %v162_v57 }
  0xe6   : > { %v183_v60 = vsel %vm182_vm2, %v181_v59, 0.0 }
  0xe7   : > { %184 = vadd.xlane.f32.xlu0 %v183_v60 }
 0x110   :  { %205 = vxpose.xlu0.b32.start.end [1/1] (short) (narrow) (%p73_p1), %v189_v1, 8 }
 0x15a   : > { %v185_v62 = vpop.xlane.xlu0 %184 }
 0x15b   : > { %v186_v63 = vmul.f32 %v185_v62, %v158_v61  ;;  %75 = sbr.rel (!%p73_p1) target bundleno = 12 (0xc), region = 134 }
 0x15d   : > { %v187_v0 = vsub.f32 %v181_v59, %v186_v63 }
 0x15f   : > { %188 = vst [vmem:[#allocation1] sm:$0xff] %v187_v0 }
 0x1b4   :  { %v221_v5 = vpop.trf.xlu0 }
 0x1b5   :  { %237 = vst [vmem:[#allocation5] sm:$0x1] %v221_v5 }
 0x1bc   :  { %v246_v6 = vld [vmem:[#allocation5] sm:$0x1] }
 0x1bd   :  { %249 = vst [vmem:[#allocation6] sm:$0x1] %v246_v6 }
 0x1be LB: > { %v293_v7 = vld [vmem:[%s660_s27] sm:$0xff]  ;;  %s295_s27 = scalar_lea.vmem %s660_s27, 8   ;;  %s660_s27 = sphi %s658_s27, %s295_s27   ;;  %s656_s26 = sphi %s654_s26, %s296_s26  }
 0x1bf   : > { %294 = vst [vmem:[%s656_s26] sm:$0xff] %v293_v7  ;;  %s296_s26 = scalar_lea.vmem %s656_s26, 8   ;;  %p290_p2 = scmp.gt.s32.totalorder %s295_s27, [#allocation1] }
 0x1c0   :  { %s313_s30 = sshll.u32 (%p290_p2), %s741_s2, 4  ;;  %s663_s4 = smov (%p290_p2), [#allocation3]   ;;  %s314_s30 = int_to_ptr.hbm [resolvable:$true] %s313_s30 }
 0x1c1   :  { %292 = sbr.rel (!%p290_p2) target bundleno = 446 (0x1be), region = 156  ;;  %s311_s5 = sshll.u32 (%p290_p2), %s663_s4, 4  ;;  %s312_s5 = int_to_ptr.vmem [resolvable:$true] %s311_s5 }
 0x1c2   :  { %316 = dma.vmem_to_hbm [thread:$0]  (%p290_p2), %s312_s5, 16, %s314_s30, [#allocation4]  }
 0x1c3   :  { %s664_s1 = smov (%p290_p2), [#allocation6]   ;;  %s324_s9 = sshll.u32 (%p290_p2), %s742_s3, 4  ;;  %s325_s9 = int_to_ptr.hbm [resolvable:$true] %s324_s9 }
 0x1c4   :  { %s322_s6 = sshll.u32 (%p290_p2), %s664_s1, 4  ;;  %s323_s6 = int_to_ptr.vmem [resolvable:$true] %s322_s6 }
 0x1c5   :  { %327 = dma.vmem_to_hbm [thread:$0]  (%p290_p2), %s323_s6, 16, %s325_s9, [#allocation7]  }
 0x1c6   :  { %638 = dma.done.wait [#allocation4], 16  }
 0x1c7   :  { %639 = vsyncadd [#allocation4], 4294967280 }
 0x1c8   :  { %640 = dma.done.wait [#allocation7], 16  }
 0x1c9   :  { %641 = vsyncadd [#allocation7], 4294967280 }
 0x1ca   :  { %336 = vsyncpa [#allocation4], 1 }
 0x1cb   :  { %337 = vsyncpa [#allocation7], 1 }

// kernel: differentiable_kf_forward.1
= control target key start
LH: loop header
LB: loop body
LE: loop exit
PB: predicated region body
PF: predicated region fallthrough
CT: control target
= control target key end

     0   :  { %11 = vsyncpa [#allocation6], 0  ;;  %s1048_s0 = inlined_call_operand.vmem [shape: f32[8,8], index: 0, kind: input, shape index: {}]   ;;  %s1049_s1 = inlined_call_operand.vmem [shape: f32[8,8], index: 1, kind: input, shape index: {}]   ;;  %s1050_s2 = inlined_call_operand.hbm [shape: f32[8,8], index: 2, kind: input, shape index: {}]   ;;  %s1051_s3 = inlined_call_operand.vmem [shape: f32[1,8], index: 3, kind: input, shape index: {}]   ;;  %s1052_s4 = inlined_call_operand.vmem [shape: f32[8,8], index: 4, kind: input, shape index: {}]   ;;  %s1053_s5 = inlined_call_operand.hbm [shape: f32[8,8], index: 5, kind: input, shape index: {}]   ;;  %s1054_s6 = inlined_call_operand.vmem [shape: f32[8,8], index: 6, kind: output, shape index: {}]  }
   0x1   :  { %s22_s23 = sshll.u32 %s1050_s2, 4  ;;  %s23_s23 = int_to_ptr.hbm [resolvable:$true] %s22_s23 }
   0x2   :  { %12 = vsyncpa [#allocation8], 0  ;;  %s908_s24 = smov [#allocation5]   ;;  %s37_s28 = sshll.u32 %s1053_s5, 4  ;;  %s38_s28 = int_to_ptr.hbm [resolvable:$true] %s37_s28 }
   0x3   :  { %s24_s25 = sshll.u32 %s908_s24, 4  ;;  %s909_s29 = smov [#allocation7]   ;;  %s25_s25 = int_to_ptr.vmem [resolvable:$true] %s24_s25 }
   0x4   :  { %27 = dma.hbm_to_vmem [thread:$0]  %s23_s23, 128, %s25_s25, [#allocation6]  }
   0x5   :  { %s39_s30 = sshll.u32 %s909_s29, 4  ;;  %s40_s30 = int_to_ptr.vmem [resolvable:$true] %s39_s30 }
   0x6   :  { %42 = dma.hbm_to_vmem [thread:$0]  %s38_s28, 128, %s40_s30, [#allocation8]  }
   0x7   :  { %904 = dma.done.wait [#allocation6], 128  }
   0x8   :  { %905 = vsyncadd [#allocation6], 4294967168 }
   0x9   :  { %906 = dma.done.wait [#allocation8], 128  }
   0xa   :  { %907 = vsyncadd [#allocation8], 4294967168  ;;  %vm54_vm0 = vcmask 64512   ;;  %v954_v0 = vld [vmem:[%s1049_s1] sm:$0xff]  ;;  %v53_v1 = vld [vmem:[#allocation5] sm:$0xff]  ;;  %vm157_vm1 = vcmask 57344  }
   0xb   :  { %73 = vmatpush.msra.mxu1 %v954_v0  ;;  %v959_v2 = vld [vmem:[#allocation7] sm:$0xff]  ;;  %vm767_vm2 = vcmask 1040384   ;;  %vm763_vm3 = vcmask 7168   ;;  %vm707_vm4 = vcmask 588800  }
   0xc   :  { %800 = vmatmul.msk.f32.vlgmr.msra.gmra.mxu1 %vm54_vm0, %v53_v1  ;;  %v104_v3 = vld [vmem:[%s1052_s4] sm:$0xff] }
   0xd   :  { %801 = vmatpush.xpose.msk.msrb.mxu1 %vm54_vm0, %v53_v1  ;;  %105 = vst.msk [vmem:[#allocation4] sm:$0xff] %vm54_vm0, %v104_v3  ;;  %v51_v4 = vld [vmem:[%s1048_s0] sm:$0xff] }
   0xe   :  { %v106_v7 = vld [vmem:[%s1051_s3] sm:$0x1] }
  0x14   :  { %802 = vmatmul.msk.f32.vlgmr.msrb.gmra.mxu1 %vm54_vm0, %v959_v2  ;;  %v595_v35 = vld [vmem:[#allocation4] sm:$0xff] }
  0x89   :  { %v75_v5 = vpop.f32.mrf.mxu1 }
  0x8a   :  { %v78_v6 = vsub.f32 %v51_v4, %v75_v5 }
  0x8c   :  { %803 = vmatpush.xpose.msk.msra.mxu2 %vm54_vm0, %v78_v6  ;;  %805 = vmatpush.xpose.msk.msra.mxu3 %vm54_vm0, %v78_v6 }
  0x8d   :  { %807 = vmatpush.xpose.msk.msra.mxu0 %vm54_vm0, %v78_v6  ;;  %809 = vmatpush.xpose.msk.msra.mxu1 %vm54_vm0, %v78_v6 }
  0x8f   :  { %804 = vmatmul.msk.f32.vlgmr.msra.gmra.mxu2 %vm54_vm0, %v106_v7  ;;  %806 = vmatmul.msk.f32.vlgmr.msra.gmra.mxu3 %vm54_vm0, %v104_v3 }
  0x90   :  { %811 = vmatpush.xpose.msk.msrb.mxu2 %vm54_vm0, %v78_v6  ;;  %813 = vmatpush.xpose.msk.msrb.mxu3 %vm54_vm0, %v78_v6 }
  0x91   :  { %815 = vmatpush.xpose.msk.msrb.mxu0 %vm54_vm0, %v78_v6  ;;  %817 = vmatpush.xpose.msk.msrb.mxu1 %vm54_vm0, %v78_v6  ;;  %v100_v8 = vpop.f32.mrf.mxu1 }
  0x92   :  { %103 = vst.msk [vmem:[#allocation2] sm:$0xff] %vm54_vm0, %v100_v8 }
  0x94   :  { %819 = vmatpush.xpose.msk.msra.mxu2 %vm54_vm0, %v78_v6  ;;  %821 = vmatpush.xpose.msk.msra.mxu3 %vm54_vm0, %v78_v6 }
  0x99   :  { %v107_v9 = vld [vmem:[#allocation2 + $0x7] sm:$0x1]  ;;  %v161_v14 = vld [vmem:[#allocation2] sm:$0x1]  ;;  %v211_v18 = vld [vmem:[#allocation2 + $0x1] sm:$0x1] }
  0x9a   :  { %v261_v21 = vld [vmem:[#allocation2 + $0x2] sm:$0x1]  ;;  %v311_v24 = vld [vmem:[#allocation2 + $0x3] sm:$0x1]  ;;  %v361_v28 = vld [vmem:[#allocation2 + $0x4] sm:$0x1] }
  0x9b   :  { %v411_v31 = vld [vmem:[#allocation2 + $0x5] sm:$0x1]  ;;  %v461_v39 = vld [vmem:[#allocation2 + $0x6] sm:$0x1] }
 0x112   :  { %v131_v10 = vpop.f32.mrf.mxu2  ;;  %v154_v11 = vpop.f32.mrf.mxu3 }
 0x113   :  { %v132_v12 = vadd.f32 %v131_v10, %v107_v9  ;;  %160 = vst.msk [vmem:[#allocation4 + $0x8] sm:$0xff] %vm54_vm0, %v154_v11  ;;  %810 = vmatmul.msk.f32.vlgmr.msra.gmra.mxu1 %vm54_vm0, %v154_v11 }
 0x114   :  { %825 = vmatpush.xpose.msk.msra.mxu1 %vm54_vm0, %v78_v6 }
 0x115   :  { %158 = vst.msk [vmem:[#allocation3] sm:$0x1] %vm157_vm1, %v132_v12  ;;  %808 = vmatmul.msk.f32.vlgmr.msra.gmra.mxu0 %vm54_vm0, %v132_v12 }
 0x116   :  { %823 = vmatpush.xpose.msk.msra.mxu0 %vm54_vm0, %v78_v6 }
 0x11a   :  { %v596_v36 = vld [vmem:[#allocation4 + $0x8] sm:$0xff] }
 0x190   :  { %v205_v13 = vpop.f32.mrf.mxu1 }
 0x191   :  { %210 = vst.msk [vmem:[#allocation4 + $0x10] sm:$0xff] %vm54_vm0, %v205_v13  ;;  %814 = vmatmul.msk.f32.vlgmr.msrb.gmra.mxu3 %vm54_vm0, %v205_v13 }
 0x192   :  { %829 = vmatpush.xpose.msk.msrb.mxu3 %vm54_vm0, %v78_v6  ;;  %v182_v15 = vpop.f32.mrf.mxu0 }
 0x193   :  { %v183_v16 = vadd.f32 %v182_v15, %v161_v14 }
 0x195   :  { %208 = vst.msk [vmem:[#allocation3 + $0x1] sm:$0x1] %vm157_vm1, %v183_v16  ;;  %812 = vmatmul.msk.f32.vlgmr.msrb.gmra.mxu2 %vm54_vm0, %v183_v16 }
 0x196   :  { %827 = vmatpush.xpose.msk.msrb.mxu2 %vm54_vm0, %v78_v6 }
 0x198   :  { %v597_v37 = vld [vmem:[#allocation4 + $0x10] sm:$0xff] }
 0x214   :  { %v255_v17 = vpop.f32.mrf.mxu3 }
 0x215   :  { %260 = vst.msk [vmem:[#allocation4 + $0x18] sm:$0xff] %vm54_vm0, %v255_v17  ;;  %818 = vmatmul.msk.f32.vlgmr.msrb.gmra.mxu1 %vm54_vm0, %v255_v17 }
 0x216   :  { %833 = vmatpush.xpose.msk.msrb.mxu1 %vm54_vm0, %v78_v6 }
 0x218   :  { %v232_v19 = vpop.f32.mrf.mxu2 }
 0x219   :  { %v233_v20 = vadd.f32 %v232_v19, %v211_v18 }
 0x21b   :  { %258 = vst.msk [vmem:[#allocation3 + $0x2] sm:$0x1] %vm157_vm1, %v233_v20  ;;  %816 = vmatmul.msk.f32.vlgmr.msrb.gmra.mxu0 %vm54_vm0, %v233_v20 }
 0x21c   :  { %831 = vmatpush.xpose.msk.msrb.mxu0 %vm54_vm0, %v78_v6  ;;  %v598_v38 = vld [vmem:[#allocation4 + $0x18] sm:$0xff] }
 0x292   :  { %v305_v27 = vpop.f32.mrf.mxu1 }
 0x293   :  { %310 = vst.msk [vmem:[#allocation4 + $0x20] sm:$0xff] %vm54_vm0, %v305_v27  ;;  %822 = vmatmul.msk.f32.vlgmr.msra.gmra.mxu3 %vm54_vm0, %v305_v27 }
 0x298   :  { %v282_v22 = vpop.f32.mrf.mxu0 }
 0x299   :  { %v283_v23 = vadd.f32 %v282_v22, %v261_v21 }
 0x29a   :  { %v599_v46 = vld [vmem:[#allocation4 + $0x20] sm:$0xff] }
 0x29b   :  { %308 = vst.msk [vmem:[#allocation3 + $0x3] sm:$0x1] %vm157_vm1, %v283_v23  ;;  %820 = vmatmul.msk.f32.vlgmr.msra.gmra.mxu2 %vm54_vm0, %v283_v23 }
 0x29c   :  { %835 = vmatpush.xpose.msk.msra.mxu2 %vm54_vm0, %v954_v0 }
 0x316   :  { %v355_v34 = vpop.f32.mrf.mxu3 }
 0x317   :  { %360 = vst.msk [vmem:[#allocation4 + $0x28] sm:$0xff] %vm54_vm0, %v355_v34  ;;  %826 = vmatmul.msk.f32.vlgmr.msra.gmra.mxu1 %vm54_vm0, %v355_v34 }
 0x31e   :  { %v332_v25 = vpop.f32.mrf.mxu2  ;;  %v600_v48 = vld [vmem:[#allocation4 + $0x28] sm:$0xff] }
 0x31f   :  { %v333_v26 = vadd.f32 %v332_v25, %v311_v24 }
 0x321   :  { %358 = vst.msk [vmem:[#allocation3 + $0x4] sm:$0x1] %vm157_vm1, %v333_v26  ;;  %824 = vmatmul.msk.f32.vlgmr.msra.gmra.mxu0 %vm54_vm0, %v333_v26 }
 0x322   :  { %838 = vmatpush.xpose.msk.msra.mxu0 %vm54_vm0, %v954_v0 }
 0x394   :  { %v405_v42 = vpop.f32.mrf.mxu1 }
 0x395   :  { %410 = vst.msk [vmem:[#allocation4 + $0x30] sm:$0xff] %vm54_vm0, %v405_v42  ;;  %830 = vmatmul.msk.f32.vlgmr.msrb.gmra.mxu3 %vm54_vm0, %v405_v42 }
 0x39c   :  { %v601_v58 = vld [vmem:[#allocation4 + $0x30] sm:$0xff] }
 0x39e   :  { %v382_v29 = vpop.f32.mrf.mxu0 }
 0x39f   :  { %v383_v30 = vadd.f32 %v382_v29, %v361_v28 }
 0x3a1   :  { %408 = vst.msk [vmem:[#allocation3 + $0x5] sm:$0x1] %vm157_vm1, %v383_v30  ;;  %828 = vmatmul.msk.f32.vlgmr.msrb.gmra.mxu2 %vm54_vm0, %v383_v30 }
 0x3a2   :  { %851 = vmatpush.xpose.msk.msrb.mxu2 %vm54_vm0, %v954_v0 }
 0x418   :  { %v455_v50 = vpop.f32.mrf.mxu3 }
 0x419   :  { %460 = vst.msk [vmem:[#allocation4 + $0x38] sm:$0xff] %vm54_vm0, %v455_v50  ;;  %834 = vmatmul.msk.f32.vlgmr.msrb.gmra.mxu1 %vm54_vm0, %v455_v50 }
 0x420   :  { %v602_v59 = vld [vmem:[#allocation4 + $0x38] sm:$0xff] }
 0x424   :  { %v432_v32 = vpop.f32.mrf.mxu2 }
 0x425   :  { %v433_v33 = vadd.f32 %v432_v32, %v411_v31 }
 0x427   :  { %458 = vst.msk [vmem:[#allocation3 + $0x6] sm:$0x1] %vm157_vm1, %v433_v33  ;;  %832 = vmatmul.msk.f32.vlgmr.msrb.gmra.mxu0 %vm54_vm0, %v433_v33 }
 0x42f   :  { %839 = vmatmul.msk.f32.vlgmr.msra.gmra.mxu0 %vm54_vm0, %v595_v35 }
 0x437   :  { %840 = vmatmul.msk.f32.gmra.mxu0 %vm54_vm0, %v596_v36 }
 0x43f   :  { %841 = vmatmul.msk.f32.gmra.mxu0 %vm54_vm0, %v597_v37 }
 0x447   :  { %842 = vmatmul.msk.f32.gmra.mxu0 %vm54_vm0, %v598_v38 }
 0x496   :  { %v505_v55 = vpop.f32.mrf.mxu1 }
 0x497   :  { %510 = vst.msk [vmem:[#allocation4 + $0x40] sm:$0xff] %vm54_vm0, %v505_v55 }
 0x49e   :  { %v603_v60 = vld [vmem:[#allocation4 + $0x40] sm:$0xff] }
 0x4a4   :  { %v482_v40 = vpop.f32.mrf.mxu0 }
 0x4a5   :  { %v483_v41 = vadd.f32 %v482_v40, %v461_v39 }
 0x4a7   :  { %508 = vst.msk [vmem:[#allocation3 + $0x7] sm:$0x1] %vm157_vm1, %v483_v41 }
 0x4ac   :  { %v648_v43 = vpop.f32.mrf.mxu0 }
 0x4ad   :  { %675 = vxpose.xlu1.b32.start [1/9] (short) (narrow) %v648_v43, 8 }
 0x4ae   :  { %v512_v44 = vld [vmem:[#allocation3] sm:$0xff] }
 0x4af   :  { %836 = vmatmul.msk.f32.vlgmr.msra.gmra.mxu2 %vm54_vm0, %v512_v44 }
 0x4b0   :  { %849 = vmatpush.msk.msra.mxu2 %vm767_vm2, %v959_v2 }
 0x4b4   :  { %v651_v45 = vpop.f32.mrf.mxu0 }
 0x4b5   :  { %676 = vxpose.xlu1.b32.cont [2/9] (short) (narrow) %v651_v45, 8 }
 0x4b7   :  { %843 = vmatmul.msk.f32.vlgmr.msrb.gmra.mxu2 %vm54_vm0, %v599_v46 }
 0x4bc   :  { %v654_v47 = vpop.f32.mrf.mxu0 }
 0x4bd   :  { %677 = vxpose.xlu1.b32.cont [3/9] (short) (narrow) %v654_v47, 8 }
 0x4bf   :  { %844 = vmatmul.msk.f32.gmra.mxu2 %vm54_vm0, %v600_v48 }
 0x4c4   :  { %v657_v49 = vpop.f32.mrf.mxu0 }
 0x4c5   :  { %678 = vxpose.xlu1.b32.cont [4/9] (short) (narrow) %v657_v49, 8 }
 0x532   :  { %v536_v51 = vpop.f32.mrf.mxu2 }
 0x533   :  { %v539_v52 = vsub.f32 %v959_v2, %v536_v51 }
 0x535   :  { %540 = vxpose.xlu0.b32.start.end [1/1] (short) (narrow) %v539_v52, 8  ;;  %590 = vmatpush.msra.mxu3 %v539_v52 }
 0x537   :  { %852 = vmatpush.xpose.msk.msrb.mxu3 %vm54_vm0, %v954_v0 }
 0x53a   :  { %v660_v53 = vpop.f32.mrf.mxu2 }
 0x53b   :  { %679 = vxpose.xlu1.b32.cont [5/9] (short) (narrow) %v660_v53, 8 }
 0x53d   :  { %731 = vxpose.xlu0.b32.start.end [1/1] (short) (narrow) %v959_v2, 8 }
 0x542   :  { %v663_v54 = vpop.f32.mrf.mxu2 }
 0x543   :  { %680 = vxpose.xlu1.b32.cont [6/9] (short) (narrow) %v663_v54, 8 }
 0x5d9   :  { %v556_v56 = vpop.trf.xlu0 }
 0x5da   :  { %837 = vmatmul.msk.f32.vlgmr.msra.gmra.mxu3 %vm54_vm0, %v556_v56 }
 0x5e1   :  { %v747_v57 = vpop.trf.xlu0 }
 0x5e2   :  { %845 = vmatmul.msk.f32.vlgmr.msrb.gmra.mxu3 %vm54_vm0, %v601_v58  ;;  %850 = vmatmul.msk.f32.vlgmr.msra.gmra.mxu2 %vm763_vm3, %v747_v57 }
 0x5ea   :  { %846 = vmatmul.msk.f32.gmra.mxu3 %vm54_vm0, %v602_v59 }
 0x5f2   :  { %847 = vmatmul.msk.f32.gmra.mxu3 %vm54_vm0, %v603_v60 }
 0x65d   :  { %v592_v61 = vpop.f32.mrf.mxu3 }
 0x665   :  { %v666_v62 = vpop.f32.mrf.mxu3  ;;  %v788_v2 = vpop.f32.mrf.mxu2 }
 0x666   :  { %681 = vxpose.xlu1.b32.cont [7/9] (short) (narrow) %v666_v62, 8  ;;  %v789_v3 = vadd.f32 %v788_v2, %v592_v61 }
 0x66d   :  { %v669_v63 = vpop.f32.mrf.mxu3 }
 0x66e   :  { %682 = vxpose.xlu1.b32.cont [8/9] (short) (narrow) %v669_v63, 8 }
 0x675   :  { %v672_v0 = vpop.f32.mrf.mxu3 }
 0x676   :  { %683 = vxpose.xlu1.b32.end [9/9] (short) (narrow) %v672_v0, 8  ;;  %718 = vmatpush.msra.mxu1 %v672_v0 }
 0x678   :  { %719 = vmatpush.msra.mxu1 %v669_v63 }
 0x67a   :  { %720 = vmatpush.msra.mxu1 %v666_v62 }
 0x67c   :  { %721 = vmatpush.msra.mxu1 %v663_v54 }
 0x67e   :  { %722 = vmatpush.msra.mxu1 %v660_v53 }
 0x680   :  { %723 = vmatpush.msra.mxu1 %v657_v49 }
 0x682   :  { %724 = vmatpush.msra.mxu1 %v654_v47 }
 0x684   :  { %725 = vmatpush.msra.mxu1 %v651_v45 }
 0x686   :  { %726 = vmatpush.msra.mxu1 %v648_v43 }
 0x6da   :  { %v691_v1 = vpop.trf.xlu1 }
 0x6db   :  { %848 = vmatmul.msk.f32.vlgmr.msra.gmra.mxu1 %vm707_vm4, %v691_v1 }
 0x758   :  { %v728_v4 = vpop.f32.mrf.mxu1 }
 0x759   :  { %v791_v5 = vadd.f32 %v789_v3, %v728_v4 }
 0x75b   :  { %v792_v6 = vmul.f32 0.125, %v791_v5 }
 0x75d   :  { %793 = vst.msk [vmem:[%s1054_s6] sm:$0xff] %vm54_vm0, %v792_v6 }
 0x75e   :  { %798 = vsyncpa [#allocation6], 1 }
 0x75f   :  { %799 = vsyncpa [#allocation8], 1 }

</bundles_post_ra>
